<compile_context>
chip_gen: v7x
topology: tpu7x:2x2x1
jax: 0.10.0
libtpu: 0.0.40
codegen_flags: <defaults>
</compile_context>

<pallas_src>
import functools
import math

import jax
import jax.numpy as jnp
from jax.experimental import pallas as pl
from jax.experimental.pallas import tpu as pltpu

LANE = 128
_SUBLANE_PACK = 32                       # legal sublane multiple for f32/bf16/int8
_TARGET_BLOCK_BYTES = 2 * 1024 * 1024    # ~2 MiB block -> ~8 MiB double-buffered
_SMALL_M_ROWS = 512                      # below this, block over batch instead


def _cdiv(a, b):
    return -(-a // b)


def _round_up(a, m):
    return _cdiv(a, m) * m


# ---------------------------------------------------------------------------
# Kernels
# ---------------------------------------------------------------------------

def _drop_path_sample_kernel(kept_ref, x_ref, o_ref, *, inv_keep):
    """Per-sample tiled path. Block = (1, TM, 128) of one batch sample.

    kept_ref: SMEM (B,) int32 scalar-prefetch (1 = keep, 0 = drop).
    """
    b = pl.program_id(0)
    kept = kept_ref[b]

    @pl.when(kept != 0)
    def _():
        # One fused multiply per vreg, in the input's native dtype.
        o_ref[...] = (x_ref[...] * inv_keep).astype(o_ref.dtype)

    @pl.when(kept == 0)
    def _():
        # Never read x_ref here: the input index_map aliases every m-block of a
        # dropped sample to block (b, 0, 0), so its contents may be stale.
        o_ref[...] = jnp.zeros_like(o_ref)


def _drop_path_batched_kernel(x_ref, scale_ref, o_ref):
    """Batch-blocked path. Block = (TB, M, 128); scale block = (TB, 1, 128).

    scale holds the fused per-sample factor (0 or 1/keep_prob) in x dtype;
    the multiply is a plain sublane broadcast per sample row.
    """
    o_ref[...] = (x_ref[...] * scale_ref[...]).astype(o_ref.dtype)


# ---------------------------------------------------------------------------
# Wrapper
# ---------------------------------------------------------------------------

def drop_path(x, rand, keep_prob, training=True, tile_m=None, donate_x=False):
    """DropPath forward.

    x:    (B, ...) input (NCHW in the reference module).
    rand: (B,) uniform [0,1) randoms (same role as torch.rand((B,1,...,1))).
    """
    if not training:
        return x
    keep_prob = float(keep_prob)
    if keep_prob <= 0.0:
        raise ValueError("keep_prob must be > 0 (same constraint as x.div(keep_prob)).")

    B = x.shape[0]
    total = int(math.prod(x.shape[1:]))
    itemsize = jnp.dtype(x.dtype).itemsize
    inv_keep = 1.0 / keep_prob

    # Lane-dense layout: per-sample payload flattened to (B, M, 128).
    pad = (-total) % LANE
    xf = x.reshape(B, total)
    if pad:
        # TODO(synk): handle the ragged lane tail in-kernel with masked stores
        # (pltpu.store + iota mask against a prefetched `total`) instead of a
        # padded copy + output slice (two extra full-tensor HBM passes).
        xf = jnp.pad(xf, ((0, 0), (0, pad)))
    M = (total + pad) // LANE
    xf = xf.reshape(B, M, LANE)            # contiguous reshape: free

    mask_f = jnp.floor(keep_prob + rand.astype(jnp.float32))   # (B,) of 0.0 / 1.0

    cost = pl.CostEstimate(
        flops=B * M * LANE,
        transcendentals=0,
        bytes_accessed=2 * B * M * LANE * itemsize,
    )

    if M >= _SMALL_M_ROWS:
        # ---------------- per-sample tiled path ----------------
        if tile_m is None:
            tile_m = max(_SUBLANE_PACK, _TARGET_BLOCK_BYTES // (LANE * itemsize))
        tile_m = max(_SUBLANE_PACK, (tile_m // _SUBLANE_PACK) * _SUBLANE_PACK)

        if M <= tile_m:
            if B == 1:
                # Never a single grid step: split M so both v7x TCs get work.
                TM = min(M, _round_up(_cdiv(M, 2), _SUBLANE_PACK))
            else:
                TM = M                      # full extent: always layout-legal
        else:
            TM = tile_m
        m_steps = _cdiv(M, TM)

        kept = mask_f.astype(jnp.int32)     # (B,) 0/1, scalar-prefetched to SMEM

        out = pl.pallas_call(
            functools.partial(_drop_path_sample_kernel, inv_keep=inv_keep),
            out_shape=jax.ShapeDtypeStruct((B, M, LANE), x.dtype),
            grid_spec=pltpu.PrefetchScalarGridSpec(
                num_scalar_prefetch=1,
                grid=(B, m_steps),
                in_specs=[pl.BlockSpec(
                    (1, TM, LANE),
                    # Dropped samples collapse all m-blocks to (b, 0, 0); Pallas
                    # skips re-fetch on consecutive identical block indices, so
                    # their HBM reads (beyond the first block) are elided.
                    lambda b, m, kept_ref: (b, m * kept_ref[b], 0))],
                out_specs=pl.BlockSpec((1, TM, LANE),
                                       lambda b, m, kept_ref: (b, m, 0)),
            ),
            compiler_params=pltpu.CompilerParams(
                dimension_semantics=("parallel", "parallel")),
            cost_estimate=cost,
            # Operand index includes the scalar-prefetch arg, so xf is input 1.
            input_output_aliases={1: 0} if donate_x else {},
        )(kept, xf)

    else:
        # ---------------- batch-blocked small-payload path ----------------
        per_sample_bytes = M * LANE * itemsize
        TB = max(1, min(B, _TARGET_BLOCK_BYTES // per_sample_bytes))
        if B >= 2 and TB >= B:
            TB = _cdiv(B, 2)                # keep >= 2 grid steps (v7x two-TC rule)
        b_steps = _cdiv(B, TB)

        # Per-sample fused factor (0 or 1/keep_prob) in x dtype, replicated over
        # lanes so the in-kernel broadcast is a plain sublane broadcast.
        scale = (mask_f * inv_keep).astype(x.dtype).reshape(B, 1, 1)
        scale = jnp.broadcast_to(scale, (B, 1, LANE))

        out = pl.pallas_call(
            _drop_path_batched_kernel,
            out_shape=jax.ShapeDtypeStruct((B, M, LANE), x.dtype),
            grid_spec=pltpu.PrefetchScalarGridSpec(
                num_scalar_prefetch=0,
                grid=(b_steps,),
                in_specs=[pl.BlockSpec((TB, M, LANE), lambda i: (i, 0, 0)),
                          pl.BlockSpec((TB, 1, LANE), lambda i: (i, 0, 0))],
                out_specs=pl.BlockSpec((TB, M, LANE), lambda i: (i, 0, 0)),
            ),
            compiler_params=pltpu.CompilerParams(
                dimension_semantics=("parallel",)),
            cost_estimate=cost,
            input_output_aliases={0: 0} if donate_x else {},
        )(xf, scale)

    out = out.reshape(B, M * LANE)
    if pad:
        out = out[:, :total]
    return out.reshape(x.shape)


# ---------------------------------------------------------------------------
# Self-test
# ---------------------------------------------------------------------------

if __name__ == "__main__":
    key = jax.random.PRNGKey(0)
    kx1, kx2, kx3, kx4, kr = jax.random.split(key, 5)

    drop_prob = 0.3
    keep_prob = 1.0 - drop_prob

    def reference(x, rand):
        # pure-JAX reference matching the PyTorch module
        mask = jnp.floor(keep_prob + rand).reshape((-1,) + (1,) * (x.ndim - 1))
        return (x / keep_prob) * mask.astype(x.dtype)

    def check(x, rand, name):
        out = jax.block_until_ready(drop_path(x, rand, keep_prob, training=True))
        ref = reference(x, rand)
        assert out.shape == x.shape and out.dtype == x.dtype, f"shape/dtype: {name}"
        assert jnp.allclose(out, ref, atol=1e-6, rtol=1e-5), f"mismatch: {name}"

    # 1) module-sized example (B=2, C=4, H=W=16): small-payload batch-blocked path
    x1 = jax.random.normal(kx1, (2, 4, 16, 16), dtype=jnp.float32)
    r1 = jax.random.uniform(kr, (2,), dtype=jnp.float32)
    check(x1, r1, "batched path")

    # 2) larger per-sample payload: per-sample tiled path, one kept + one dropped
    x2 = jax.random.normal(kx2, (2, 5, 128, 128), dtype=jnp.float32)
    r2 = jnp.array([0.9, 0.1], dtype=jnp.float32)       # -> kept, dropped
    check(x2, r2, "per-sample path (kept + dropped)")

    # 3) B == 1: M axis split into >= 2 blocks (v7x two-TC rule); dropped sample
    x3 = jax.random.normal(kx3, (1, 5, 128, 128), dtype=jnp.float32)
    r3 = jnp.array([0.1], dtype=jnp.float32)            # -> dropped
    check(x3, r3, "B=1 split path (dropped)")

    # 4) ragged tail (total % 128 != 0): pad/slice fallback path
    x4 = jax.random.normal(kx4, (2, 3, 5, 7), dtype=jnp.float32)
    r4 = jax.random.uniform(jax.random.fold_in(kr, 1), (2,), dtype=jnp.float32)
    check(x4, r4, "ragged-tail path")

    # training=False path is identity
    out_eval = jax.block_until_ready(drop_path(x1, r1, keep_prob, training=False))
    assert jnp.array_equal(out_eval, x1), "eval path must be identity"

    print("KERNEL_OK")
</pallas_src>

<mosaic_0001>
module attributes {stable_mosaic.version = 11 : i64} {
  func.func @_drop_path_batched_kernel(%arg0: i32, %arg1: memref<1x8x128xf32, #tpu.memory_space<vmem>>, %arg2: memref<1x1x128xf32, #tpu.memory_space<vmem>>, %arg3: memref<1x8x128xf32, #tpu.memory_space<vmem>>) attributes {dimension_semantics = [#tpu.dimension_semantics<parallel>], iteration_bounds = array<i64: 2>, scalar_prefetch = 0 : i64, scratch_operands = 0 : i64, tpu.core_type = #tpu.core_type<tc>, window_params = [{transform_indices = @transform_0, window_bounds = array<i64: 1, 8, 128>}, {transform_indices = @transform_1, window_bounds = array<i64: 1, 1, 128>}, {transform_indices = @transform_2, window_bounds = array<i64: 1, 8, 128>}]} {
    %c0 = arith.constant 0 : index
    %c0_0 = arith.constant 0 : index
    %c0_1 = arith.constant 0 : index
    %0 = vector.load %arg1[%c0, %c0_0, %c0_1] : memref<1x8x128xf32, #tpu.memory_space<vmem>>, vector<1x8x128xf32>
    %c0_2 = arith.constant 0 : index
    %c0_3 = arith.constant 0 : index
    %c0_4 = arith.constant 0 : index
    %1 = vector.load %arg2[%c0_2, %c0_3, %c0_4] : memref<1x1x128xf32, #tpu.memory_space<vmem>>, vector<1x1x128xf32>
    %2 = vector.broadcast %1 : vector<1x1x128xf32> to vector<1x8x128xf32>
    %3 = arith.mulf %0, %2 : vector<1x8x128xf32>
    %c0_5 = arith.constant 0 : index
    %c0_6 = arith.constant 0 : index
    %c0_7 = arith.constant 0 : index
    %4 = vector.load %arg3[%c0_5, %c0_6, %c0_7] : memref<1x8x128xf32, #tpu.memory_space<vmem>>, vector<1x8x128xf32>
    tpu.vector_store %arg3[%c0_5, %c0_6, %c0_7], %3 {strides = array<i32>} : memref<1x8x128xf32, #tpu.memory_space<vmem>>, vector<1x8x128xf32>,
    return
  }
  func.func @transform_0(%arg0: i32) -> (i32, i32, i32) {
    %c0_i32 = arith.constant 0 : i32
    %c0_i32_0 = arith.constant 0 : i32
    %c0_i32_1 = arith.constant 0 : i32
    return %arg0, %c0_i32, %c0_i32_0 : i32, i32, i32
  }
  func.func @transform_1(%arg0: i32) -> (i32, i32, i32) {
    %c0_i32 = arith.constant 0 : i32
    %c0_i32_0 = arith.constant 0 : i32
    %c0_i32_1 = arith.constant 0 : i32
    return %arg0, %c0_i32, %c0_i32_0 : i32, i32, i32
  }
  func.func @transform_2(%arg0: i32) -> (i32, i32, i32) {
    %c0_i32 = arith.constant 0 : i32
    %c0_i32_0 = arith.constant 0 : i32
    %c0_i32_1 = arith.constant 0 : i32
    return %arg0, %c0_i32, %c0_i32_0 : i32, i32, i32
  }
}

</mosaic_0001>

<bundles_post_ra>
// kernel: tpu_custom_call.1
= control target key start
LH: loop header
LB: loop body
LE: loop exit
PB: predicated region body
PF: predicated region fallthrough
CT: control target
= control target key end

     0   :  { %7 = vsyncpa [#allocation3], 0  ;;  %s616_s0 = inlined_call_operand.hbm [shape: f32[2,8,128], index: 0, kind: input, shape index: {}]   ;;  %s617_s1 = inlined_call_operand.vmem [shape: f32[2,1,128], index: 1, kind: input, shape index: {}]   ;;  %s618_s2 = inlined_call_operand.hbm [shape: f32[2,8,128], index: 2, kind: output, shape index: {}]  }
   0x1   :  { %9 = vsyncpa [#allocation3 + $0x1], 0 }
   0x2   :  { %10 = vsyncpa [#allocation4], 0 }
   0x3   :  { %12 = vsyncpa [#allocation4 + $0x1], 0  ;;  %s450_s9 = smov 0   ;;  %s452_s10 = smov 0  }
   0x4   :  { %s454_s11 = smov 0   ;;  %s456_s12 = smov 0  }
   0x5 LB: > { %s471_s13 = sadd.s32 4294967295, %s431_s12   ;;  %s276_s14 = sadd.s32 4294967294, %s431_s12   ;;  %s431_s12 = sphi %s456_s12, %s633_s12   ;;  %s427_s11 = sphi %s454_s11, %s632_s11   ;;  %s423_s10 = sphi %s452_s10, %s631_s10   ;;  %s419_s9 = sphi %s450_s9, %s630_s9  }
   0x6   : > { %s475_s15 = sadd.s32 1, %s431_s12   ;;  %s25_s16 = sadd.s32 1, %s427_s11 }
   0x7   : > { %s22_s17 = ssub.s32 %s431_s12, %s475_s15  ;;  %p32_p0 = scmp.ne.s32.totalorder %s427_s11, %s423_s10 }
   0x8   : > { %p23_p1 = scmp.eq.s32.totalorder %s22_s17, 0  ;;  %p33_p2 = scmp.eq.s32.totalorder %s431_s12, 0 }
   0x9   : > { %p38_p3 = scmp.ne.s32.totalorder %s423_s10, %s419_s9  ;;  %p39_p4 = scmp.eq.s32.totalorder %s471_s13, 0 }
   0xa   : > { %s487_s18 = scalar_select %p23_p1, %s427_s11, %s25_s16  }
   0xb   : > { %p489_p5 = por %p33_p2, %p32_p0  ;;  %p493_p6 = por %p39_p4, %p38_p3 }
   0xc   : > { %p88_p7 = scmp.eq.s32.totalorder %s471_s13, 1  ;;  %p94_p8 = scmp.eq.s32.totalorder %s276_s14, 1 }
   0xd   : > { %p301_p10 = scmp.lt.s32.totalorder %s431_s12, 2  ;;  %s114_s23 = sand.u32 1, %s427_s11  }
   0xe   : > { %p500_p11 = por %p88_p7, %p32_p0  ;;  %p504_p12 = por %p94_p8, %p38_p3 }
   0xf   : > { %s280_s24 = sshll.u32 %s431_s12, 7  ;;  %s279_s25 = sshll.u32 %s114_s23, 3 }
  0x10   : > { %s622_s21 = scalar_select %p500_p11, 1, 0 }
  0x11   : > { %s623_s22 = scalar_select %p504_p12, 1, 0 }
  0x12   : > { %s513_s28 = scalar_lea.hbm %s616_s0, %s280_s24  ;;  %s118_s29 = scalar_lea.vmem [#allocation2], %s279_s25 }
  0x13   : > { %s125_s30 = sshll.u32 %s118_s29, 4  ;;  %p517_p13 = pnand %p301_p10, %p489_p5  ;;  %s521_s30 = int_to_ptr.vmem [resolvable:$true] %s125_s30 }
  0x14   : > { %s115_s4 = scalar_lea.sflag [#allocation3], %s114_s23  ;;  %s335_s5 = scalar_lea.hbm %s513_s28, 128 }
  0x15   : > { %p336_p2 = scmp.ne.s32.totalorder %s513_s28, %s335_s5  ;;  %p337_p3 = pneg %p517_p13 }
  0x16   : > { %s340_s8 = scalar_lea.hbm %s616_s0, 256  ;;  %p341_p5 = scmp.lt.u32.totalorder %s513_s28, %s616_s0 }
  0x17   : > { %p338_p4 = pnand %p337_p3, %p336_p2  ;;  %p342_p8 = scmp.lt.u32.totalorder %s340_s8, %s335_s5 }
  0x18   : > { %p344_p9 = scmp.lt.u32.totalorder %s335_s5, %s513_s28 }
  0x19   : > { %p339_p7 = pneg %p338_p4  ;;  %p343_p10 = por %p342_p8, %p341_p5 }
  0x1b   : > { %p345_p0 = por %p344_p9, %p343_p10 }
  0x1d   : > { %p346_p1 = pnand %p345_p0, %p339_p7 }
  0x1f   : > { %349 = shalt.err (!%p346_p1)
}
  0x20   : > { %s350_s17 = scalar_lea.vmem %s521_s30, 128  ;;  %s433_s19 = smov [#allocation2]  }
  0x21   : > { %p351_p2 = scmp.ne.s32.totalorder %s521_s30, %s350_s17  ;;  %s355_s23 = sshll.u32 %s433_s19, 4  ;;  %s356_s23 = int_to_ptr.vmem [resolvable:$false] %s355_s23 }
  0x22   : > { %s357_s24 = scalar_lea.vmem %s356_s23, 256  ;;  %p358_p11 = scmp.lt.s32.totalorder %s521_s30, %s356_s23 }
  0x23   : > { %p353_p4 = pnand %p351_p2, %p337_p3  ;;  %p359_p5 = scmp.lt.s32.totalorder %s357_s24, %s350_s17 }
  0x25   : > { %p354_p12 = pneg %p353_p4  ;;  %p360_p8 = por %p359_p5, %p358_p11 }
  0x27   : > { %p361_p9 = pnand %p360_p8, %p354_p12 }
  0x29   : > { %364 = shalt.err (!%p361_p9)
}
  0x2a   : > { %296 = dma.hbm_to_vmem [thread:$0]  (!%p517_p13), %s513_s28, 128, %s521_s30, %s115_s4  }
  0x2b   : > { %p625_p0 = scmp.lt.s32.totalorder %s431_s12, 3  ;;  %p626_p1 = scmp.ge.s32.totalorder %s431_s12, 1 }
  0x2d   : > { %p137_p3 = pnand %p626_p1, %p625_p0 }
  0x2e   : > { %s555_s25 = sand.u32 (!%p137_p3), 1, %s423_s10  }
  0x2f   : > { %140 = sbr.rel (%p137_p3) target bundleno = 83 (0x53), region = 28  ;;  %s282_s26 = sshll.u32 (!%p137_p3), %s555_s25, 3 }
  0x30   : > { %s143_s27 = scalar_lea.sflag (!%p137_p3), [#allocation3], %s555_s25  ;;  %s146_s29 = scalar_lea.vmem (!%p137_p3), [#allocation2], %s282_s26 }
  0x36   : > { %410 = dma.done.wait (%p493_p6), %s143_s27, 128  }
  0x37   : > { %412 = vsyncadd (%p493_p6), %s143_s27, 4294967168  ;;  %p170_p11 = scmp.lt.s32.totalorder %s471_s13, 1  ;;  %s169_s5 = scalar_lea.vmem [#allocation5], %s282_s26  ;;  %v173_v0 = vld [vmem:[%s146_s29] sm:$0xff] }
  0x38   : > { %s197_s6 = sshll.u32 %s169_s5, 4  ;;  %s286_s7 = sshll.u32 %s471_s13, 7  ;;  %s569_s6 = int_to_ptr.vmem [resolvable:$true] %s197_s6 }
  0x39   : > { %s171_s28 = scalar_select %p170_p11, %s471_s13, 1 }
  0x3a   : > { %s574_s14 = scalar_lea.hbm %s618_s2, %s286_s7  ;;  %s184_s16 = scalar_lea.sflag [#allocation4], %s555_s25 }
  0x3b   : > { %s172_s4 = scalar_lea.vmem %s617_s1, %s171_s28  ;;  %s365_s17 = scalar_lea.vmem %s569_s6, 128 }
  0x3c   : > { %v284_v1 = vld [vmem:[%s172_s4] ss:$0 sm:$0xff]  ;;  %p366_p6 = scmp.ne.s32.totalorder %s569_s6, %s365_s17  ;;  %p627_p12 = scmp.ne.s32.totalorder %s622_s21, 0 }
  0x3d   : > { %v181_v2 = vmul.f32 %v284_v1, %v173_v0  ;;  %s434_s13 = smov [#allocation5]  }
  0x3e   : > { %p367_p13 = pnand %p366_p6, %p627_p12  ;;  %s369_s19 = sshll.u32 %s434_s13, 4  ;;  %s370_s19 = int_to_ptr.vmem [resolvable:$false] %s369_s19 }
  0x3f   : > { %182 = vst [vmem:[%s169_s5] sm:$0xff] %v181_v2  ;;  %s371_s23 = scalar_lea.vmem %s370_s19, 256  ;;  %p372_p10 = scmp.lt.s32.totalorder %s569_s6, %s370_s19 }
  0x40   : > { %p368_p7 = pneg %p367_p13  ;;  %p373_p2 = scmp.lt.s32.totalorder %s371_s23, %s365_s17 }
  0x42   : > { %p374_p4 = por %p373_p2, %p372_p10 }
  0x44   : > { %p375_p5 = pnand %p374_p4, %p368_p7 }
  0x46   : > { %378 = shalt.err (!%p375_p5)
}
  0x47   : > { %s379_s24 = scalar_lea.hbm %s574_s14, 128  ;;  %s383_s27 = scalar_lea.hbm %s618_s2, 256 }
  0x48   : > { %p380_p8 = scmp.ne.s32.totalorder %s574_s14, %s379_s24  ;;  %p384_p1 = scmp.lt.u32.totalorder %s574_s14, %s618_s2 }
  0x49   : > { %p385_p3 = scmp.lt.u32.totalorder %s383_s27, %s379_s24  ;;  %p387_p6 = scmp.lt.u32.totalorder %s379_s24, %s574_s14 }
  0x4a   : > { %p381_p9 = pnand %p380_p8, %p627_p12 }
  0x4b   : > { %p386_p11 = por %p385_p3, %p384_p1 }
  0x4c   : > { %p382_p0 = pneg %p381_p9 }
  0x4d   : > { %p388_p13 = por %p387_p6, %p386_p11 }
  0x4f   : > { %p389_p7 = pnand %p388_p13, %p382_p0 }
  0x51   : > { %392 = shalt.err (!%p389_p7)
}
  0x52   : > { %291 = dma.vmem_to_hbm [thread:$0]  (%p627_p12), %s569_s6, 128, %s574_s14, %s184_s16  }
  0x53 PF: > { %s209_s30 = sand.u32 1, %s419_s9   ;;  %p628_p10 = scmp.ne.s32.totalorder %s623_s22, 0 }
  0x54   : > { %p629_p2 = scmp.ge.s32.totalorder %s431_s12, 2  ;;  %s210_s3 = scalar_lea.sflag [#allocation4], %s209_s30 }
  0x56   : > { %p298_p4 = pnand %p629_p2, %p628_p10 }
  0x58   : > { %414 = dma.done.wait (!%p298_p4), %s210_s3, 128  }
  0x59   : > { %416 = vsyncadd (!%p298_p4), %s210_s3, 4294967168  ;;  %p15_p5 = scmp.ge.s32.totalorder %s475_s15, 4   ;;  %s630_s9 = smov %s423_s10 }
  0x5a   : > { %s631_s10 = smov %s427_s11  ;;  %s632_s11 = smov %s487_s18 }
  0x5b   : > { %s633_s12 = smov %s475_s15  ;;  %17 = sbr.rel (!%p15_p5) target bundleno = 5 (0x5), region = 76 }
  0x62   :  { %215 = vsyncpa [#allocation3], 1 }
  0x63   :  { %217 = vsyncpa [#allocation3 + $0x1], 1 }
  0x64   :  { %218 = vsyncpa [#allocation4], 1 }
  0x65   :  { %220 = vsyncpa [#allocation4 + $0x1], 1 }

</bundles_post_ra>
